<compile_context>
chip_gen: v7x
topology: tpu7x:2x2x1
jax: 0.10.0
libtpu: 0.0.40
codegen_flags: <defaults>
</compile_context>

<pallas_src>
import jax
import jax.numpy as jnp
from jax.experimental import pallas as pl
from jax.experimental.pallas import tpu as pltpu


# ----------------------------------------------------------------------------
# Small helpers
# ----------------------------------------------------------------------------

def _round_up(x, m):
    return (x + m - 1) // m * m


def _sublane_pack(elt_bytes):
    # sublane packing factor used for VMEM footprint estimates
    return {4: 8, 2: 16, 1: 32}.get(int(elt_bytes), 8)


def _vmem_capacity_bytes():
    try:
        info = pltpu.get_tpu_info()
        for name in ("vmem_capacity_bytes", "vmem_bytes", "vmem_size_bytes"):
            v = getattr(info, name, None)
            if v:
                return int(v)
    except Exception:
        pass
    return 64 << 20   # conservative fallback: v7x per-TensorCore VMEM


def _num_tensorcores():
    try:
        info = pltpu.get_tpu_info()
        for name in ("num_cores", "core_count", "num_tensorcores"):
            v = getattr(info, name, None)
            if v:
                return int(v)
    except Exception:
        pass
    return 1


def _largest_divisor_leq(n, k):
    k = max(1, min(int(n), int(k)))
    for d in range(k, 0, -1):
        if n % d == 0:
            return d
    return 1


# ----------------------------------------------------------------------------
# Fused one-pass kernel (batch-coalesced, channels-first)
# ----------------------------------------------------------------------------

def _senet_fused_kernel(x_ref, w1_ref, w2_ref, o_ref):
    # x_ref/o_ref: (bb, C, HW); w1: (Cr, C); w2: (C, Cr)
    hw = x_ref.shape[-1]
    # Global average pool: f32 accumulation straight from the VMEM tile
    y = jnp.sum(x_ref[...], axis=-1, dtype=jnp.float32) * (1.0 / hw)   # (bb, C)
    # fc1 (1x1 conv, no bias) + ReLU:  (bb, C) @ (Cr, C)^T
    h = jax.lax.dot_general(y, w1_ref[...].astype(jnp.float32),
                            (((1,), (1,)), ((), ())),
                            preferred_element_type=jnp.float32)        # (bb, Cr)
    h = jnp.maximum(h, 0.0)
    # fc2 (1x1 conv, no bias):  (bb, Cr) @ (C, Cr)^T
    s = jax.lax.dot_general(h, w2_ref[...].astype(jnp.float32),
                            (((1,), (1,)), ((), ())),
                            preferred_element_type=jnp.float32)        # (bb, C)
    # sigmoid(s) < 0.5  <=>  s < 0 : exact 0/1 mask, no transcendental.
    mask = (s < 0.0).astype(o_ref.dtype)                               # (bb, C)
    o_ref[...] = x_ref[...] * mask[:, :, None]


# ----------------------------------------------------------------------------
# Split (two-pass) path: XLA mask + tiled streaming scale kernel
# ----------------------------------------------------------------------------

def _senet_scale_kernel(m_ref, x_ref, o_ref):
    # m_ref (1, rows, 1) broadcasts against x_ref/o_ref (1, rows, cols)
    o_ref[...] = x_ref[...] * m_ref[...]


def _senet_mask(x_nchw, w1, w2):
    # Tiny pool + FCs + threshold.  mean(dtype=f32) avoids materializing a
    # full-size f32 copy of x for bf16 inputs.
    y = jnp.mean(x_nchw, axis=(2, 3), dtype=jnp.float32)               # (B, C)
    h = jnp.maximum(y @ w1.astype(jnp.float32).T, 0.0)                 # (B, Cr)
    s = h @ w2.astype(jnp.float32).T                                   # (B, C)
    return (s < 0.0).astype(x_nchw.dtype)        # == (sigmoid(s) < 0.5)


def _pick_split_tiles(C, HW, elt, target_bytes):
    """Pick (rows over C, cols over HW) for ~target_bytes padded blocks."""
    sub = _sublane_pack(elt)
    hw_pad = _round_up(HW, 128)
    if HW <= 128 or hw_pad * elt * sub <= target_bytes:
        cols = HW                                 # full HW on lanes
    else:
        cols = max(128, (target_bytes // (sub * elt)) // 128 * 128)
        cols = HW if cols >= HW else int(cols)    # multiple of 128 or full
    cols_pad = _round_up(cols, 128)
    rows = (target_bytes // (cols_pad * elt)) // sub * sub
    rows = max(sub, int(rows))
    rows = min(C, rows)                           # multiple of `sub` or full C
    return int(rows), int(cols)


# ----------------------------------------------------------------------------
# Wrapper
# ----------------------------------------------------------------------------

def senet_pallas(x_nchw, w1, w2, *, mode="auto",
                 split_block_bytes=4 << 20, coalesce_target_bytes=2 << 20,
                 donate_x=False):
    """SENet forward.  x_nchw: (B, C, H, W); w1: (C//r, C); w2: (C, C//r).

    mode:
      "fused" - one-pass kernel, batch-coalesced blocks (bb, C, HW).
      "split" - XLA-computed (B, C) mask + tiled Pallas scale kernel.
      "auto"  - fused when the padded block fits the VMEM budget (with
                batch coalescing); split otherwise or when the fused
                pipeline would be too shallow for large slabs.
    """
    assert mode in ("auto", "fused", "split")
    B, C, H, W = x_nchw.shape
    HW = H * W
    Cr = w1.shape[0]
    assert w1.shape == (Cr, C) and w2.shape == (C, Cr)

    elt = x_nchw.dtype.itemsize
    sub = _sublane_pack(elt)
    welt = w1.dtype.itemsize
    wsub = _sublane_pack(welt)

    vmem_cap = _vmem_capacity_bytes()
    budget = int(0.80 * vmem_cap)            # selection budget
    vmem_ceiling = int(0.85 * vmem_cap)      # never request above capacity
    slack = 2 << 20

    # Padded VMEM footprints (lane dim -> 128, sublane dim -> dtype pack).
    per_sample_pad = _round_up(C, sub) * _round_up(HW, 128) * elt
    w_pad = (_round_up(Cr, wsub) * _round_up(C, 128)
             + _round_up(C, wsub) * _round_up(Cr, 128)) * welt

    def fused_need(bb):
        # in + out streams, double-buffered, plus double-buffered weights.
        return 4 * bb * per_sample_pad + 2 * w_pad + slack

    # Batch coalescing: target ~coalesce_target_bytes per block, bounded by
    # the VMEM budget, using a divisor of B (no partial batch blocks).
    bb_fit = (budget - 2 * w_pad - slack) // max(1, 4 * per_sample_pad)
    bb_target = max(1, -(-coalesce_target_bytes // per_sample_pad))
    bb = _largest_divisor_leq(B, min(B, bb_fit, bb_target)) if bb_fit >= 1 else 0
    nb = (B // bb) if bb else B

    use_split = (mode == "split") or (mode != "fused" and bb == 0)
    if mode == "fused" and bb == 0:
        bb, nb = 1, B                        # forced fused; clamp limit below
    if mode == "auto" and not use_split:
        # Too-shallow fused pipeline on big slabs: split gives the DMA engine
        # real depth (costs ~1.5x HBM traffic, only worth it in this regime).
        if nb < 2 * _num_tensorcores() and per_sample_pad > (4 << 20):
            use_split = True

    x2 = x_nchw.reshape(B, C, HW)            # channels-first, no transpose

    if not use_split:
        vmem_limit = int(min(max(fused_need(bb), 32 << 20), vmem_ceiling))
        blk = pl.BlockSpec((bb, C, HW), lambda i: (i, 0, 0))
        alias = {"input_output_aliases": {0: 0}} if donate_x else {}
        out2 = pl.pallas_call(
            _senet_fused_kernel,
            out_shape=jax.ShapeDtypeStruct(x2.shape, x2.dtype),
            grid_spec=pltpu.PrefetchScalarGridSpec(
                num_scalar_prefetch=0,
                grid=(nb,),
                in_specs=[blk,
                          pl.BlockSpec((Cr, C), lambda i: (0, 0)),
                          pl.BlockSpec((C, Cr), lambda i: (0, 0))],
                out_specs=blk),
            compiler_params=pltpu.CompilerParams(
                dimension_semantics=("parallel",),
                vmem_limit_bytes=vmem_limit),
            **alias,
        )(x2, w1, w2)
    else:
        mask3 = _senet_mask(x_nchw, w1, w2)[:, :, None]        # (B, C, 1)
        rows, cols = _pick_split_tiles(C, HW, elt, split_block_bytes)
        c_tiles = pl.cdiv(C, rows)
        h_tiles = pl.cdiv(HW, cols)
        block_pad = _round_up(rows, sub) * _round_up(cols, 128) * elt
        mask_blk_pad = _round_up(rows, sub) * 128 * elt
        need = 4 * block_pad + 2 * mask_blk_pad + slack
        vmem_limit = int(min(max(need, 16 << 20), vmem_ceiling))
        x_spec = pl.BlockSpec((1, rows, cols), lambda b, c, h: (b, c, h))
        m_spec = pl.BlockSpec((1, rows, 1), lambda b, c, h: (b, c, 0))
        alias = {"input_output_aliases": {1: 0}} if donate_x else {}
        out2 = pl.pallas_call(
            _senet_scale_kernel,
            out_shape=jax.ShapeDtypeStruct(x2.shape, x2.dtype),
            grid_spec=pltpu.PrefetchScalarGridSpec(
                num_scalar_prefetch=0,
                grid=(B, c_tiles, h_tiles),
                in_specs=[m_spec, x_spec],
                out_specs=x_spec),
            compiler_params=pltpu.CompilerParams(
                dimension_semantics=("parallel", "parallel", "parallel"),
                vmem_limit_bytes=vmem_limit),
            **alias,
        )(mask3, x2)

    return out2.reshape(B, C, H, W)


# ----------------------------------------------------------------------------
# Pure-JAX reference mirroring the PyTorch forward
# ----------------------------------------------------------------------------

def senet_reference(x, w1, w2):
    xf = x.astype(jnp.float32)
    y = jnp.mean(xf, axis=(2, 3), keepdims=True)                  # (B,C,1,1)
    y = jnp.einsum("rc,bcij->brij", w1.astype(jnp.float32), y)    # fc1
    y = jnp.maximum(y, 0.0)                                       # relu
    y = jnp.einsum("cr,brij->bcij", w2.astype(jnp.float32), y)    # fc2
    y = jax.nn.sigmoid(y)
    mask = (y < 0.5).astype(x.dtype)
    return x * mask


if __name__ == "__main__":
    key = jax.random.PRNGKey(0)
    k1, k2, k3, k4, k5 = jax.random.split(key, 5)

    def make(B, C, H, W, reduction, kx, dtype=jnp.float32):
        Cr = max(1, C // reduction)
        ka, kb, kc = jax.random.split(kx, 3)
        x = jax.random.normal(ka, (B, C, H, W), dtype=jnp.float32).astype(dtype)
        w1 = jax.random.normal(kb, (Cr, C), dtype=jnp.float32) * 0.2
        w2 = jax.random.normal(kc, (C, Cr), dtype=jnp.float32) * 0.2
        return x, w1, w2

    # 1) fused path (batch-coalesced), HW a multiple of 128
    x, w1, w2 = make(2, 64, 16, 16, 16, k1)
    out = jax.block_until_ready(senet_pallas(x, w1, w2, mode="fused"))
    assert out.shape == x.shape
    assert jnp.allclose(out, senet_reference(x, w1, w2), atol=1e-5, rtol=1e-5)

    # 2) fused path, HW=49 (channels-first kept; only VMEM lane padding,
    #    the HBM DMA stays one contiguous copy)
    x, w1, w2 = make(2, 128, 7, 7, 16, k2)
    out = jax.block_until_ready(senet_pallas(x, w1, w2, mode="fused"))
    assert jnp.allclose(out, senet_reference(x, w1, w2), atol=1e-5, rtol=1e-5)

    # 3) auto mode, batch of 4 small slabs (exercises batch coalescing)
    x, w1, w2 = make(4, 32, 14, 14, 8, k3)
    out = jax.block_until_ready(senet_pallas(x, w1, w2, mode="auto"))
    assert jnp.allclose(out, senet_reference(x, w1, w2), atol=1e-5, rtol=1e-5)

    # 4) split path, tiny block target forces tiling over C (grid=(2,4,1))
    x, w1, w2 = make(2, 64, 16, 16, 16, k4)
    out = jax.block_until_ready(
        senet_pallas(x, w1, w2, mode="split", split_block_bytes=16 << 10))
    assert jnp.allclose(out, senet_reference(x, w1, w2), atol=1e-5, rtol=1e-5)

    # 5) split path, tiling over HW lanes with a partial edge tile
    x, w1, w2 = make(2, 8, 64, 64, 4, k5)
    out = jax.block_until_ready(
        senet_pallas(x, w1, w2, mode="split", split_block_bytes=24 << 10))
    assert jnp.allclose(out, senet_reference(x, w1, w2), atol=1e-5, rtol=1e-5)

    # 6) bf16 streaming: exact 0/1 mask -> every output equals 0 or the input
    x, w1, w2 = make(2, 64, 16, 16, 16, k1, dtype=jnp.bfloat16)
    outb = jax.block_until_ready(senet_pallas(x, w1, w2, mode="fused"))
    assert outb.dtype == jnp.bfloat16
    assert bool(jnp.all((outb == 0) | (outb == x)))

    print("KERNEL_OK")
</pallas_src>

<mosaic_0001>
module attributes {stable_mosaic.version = 11 : i64} {
  func.func @_senet_fused_kernel(%arg0: i32, %arg1: memref<2x64x256xf32, #tpu.memory_space<vmem>>, %arg2: memref<4x64xf32, #tpu.memory_space<vmem>>, %arg3: memref<64x4xf32, #tpu.memory_space<vmem>>, %arg4: memref<2x64x256xf32, #tpu.memory_space<vmem>>) attributes {dimension_semantics = [#tpu.dimension_semantics<parallel>], iteration_bounds = array<i64: 1>, scalar_prefetch = 0 : i64, scratch_operands = 0 : i64, tpu.core_type = #tpu.core_type<tc>, window_params = [{transform_indices = @transform_0, window_bounds = array<i64: 2, 64, 256>}, {pipeline_mode = #tpu.pipeline_mode<synchronous>, transform_indices = @transform_1, window_bounds = array<i64: 4, 64>}, {pipeline_mode = #tpu.pipeline_mode<synchronous>, transform_indices = @transform_2, window_bounds = array<i64: 64, 4>}, {transform_indices = @transform_3, window_bounds = array<i64: 2, 64, 256>}]} {
    %c0 = arith.constant 0 : index
    %c0_0 = arith.constant 0 : index
    %c0_1 = arith.constant 0 : index
    %0 = vector.load %arg1[%c0, %c0_0, %c0_1] : memref<2x64x256xf32, #tpu.memory_space<vmem>>, vector<2x64x256xf32>
    %cst = arith.constant dense<0.000000e+00> : vector<2x64xf32>
    %1 = vector.multi_reduction <add>, %0, %cst [2] : vector<2x64x256xf32> to vector<2x64xf32>
    %cst_2 = arith.constant 3.906250e-03 : f32
    %2 = vector.broadcast %cst_2 : f32 to vector<2x64xf32>
    %3 = arith.mulf %1, %2 : vector<2x64xf32>
    %c0_3 = arith.constant 0 : index
    %c0_4 = arith.constant 0 : index
    %4 = vector.load %arg2[%c0_3, %c0_4] : memref<4x64xf32, #tpu.memory_space<vmem>>, vector<4x64xf32>
    %cst_5 = arith.constant dense<0.000000e+00> : vector<2x4xf32>
    %5 = tpu.matmul %3, %4, %cst_5 {dimension_numbers = #tpu.dot_dimension_numbers<[1], [1], [0], [0], [0, 0, 1, 0], [], []>} : vector<2x64xf32>, vector<4x64xf32>, vector<2x4xf32> -> vector<2x4xf32>
    %cst_6 = arith.constant 0.000000e+00 : f32
    %6 = vector.broadcast %cst_6 : f32 to vector<2x4xf32>
    %7 = arith.maximumf %5, %6 : vector<2x4xf32>
    %c0_7 = arith.constant 0 : index
    %c0_8 = arith.constant 0 : index
    %8 = vector.load %arg3[%c0_7, %c0_8] : memref<64x4xf32, #tpu.memory_space<vmem>>, vector<64x4xf32>
    %cst_9 = arith.constant dense<0.000000e+00> : vector<2x64xf32>
    %9 = tpu.matmul %7, %8, %cst_9 {dimension_numbers = #tpu.dot_dimension_numbers<[1], [1], [0], [0], [0, 0, 1, 0], [], []>} : vector<2x4xf32>, vector<64x4xf32>, vector<2x64xf32> -> vector<2x64xf32>
    %cst_10 = arith.constant 0.000000e+00 : f32
    %10 = vector.broadcast %cst_10 : f32 to vector<2x64xf32>
    %11 = arith.cmpf olt, %9, %10 : vector<2x64xf32>
    %12 = arith.extui %11 : vector<2x64xi1> to vector<2x64xi32>
    %13 = arith.sitofp %12 : vector<2x64xi32> to vector<2x64xf32>
    %c0_11 = arith.constant 0 : index
    %c0_12 = arith.constant 0 : index
    %c0_13 = arith.constant 0 : index
    %14 = vector.load %arg1[%c0_11, %c0_12, %c0_13] : memref<2x64x256xf32, #tpu.memory_space<vmem>>, vector<2x64x256xf32>
    %15 = vector.shape_cast %13 : vector<2x64xf32> to vector<2x64x1xf32>
    %16 = vector.broadcast %15 : vector<2x64x1xf32> to vector<2x64x256xf32>
    %17 = arith.mulf %14, %16 : vector<2x64x256xf32>
    %c0_14 = arith.constant 0 : index
    %c0_15 = arith.constant 0 : index
    %c0_16 = arith.constant 0 : index
    %18 = vector.load %arg4[%c0_14, %c0_15, %c0_16] : memref<2x64x256xf32, #tpu.memory_space<vmem>>, vector<2x64x256xf32>
    tpu.vector_store %arg4[%c0_14, %c0_15, %c0_16], %17 {strides = array<i32>} : memref<2x64x256xf32, #tpu.memory_space<vmem>>, vector<2x64x256xf32>,
    return
  }
  func.func @transform_0(%arg0: i32) -> (i32, i32, i32) {
    %c0_i32 = arith.constant 0 : i32
    %c0_i32_0 = arith.constant 0 : i32
    %c0_i32_1 = arith.constant 0 : i32
    return %arg0, %c0_i32, %c0_i32_0 : i32, i32, i32
  }
  func.func @transform_1(%arg0: i32) -> (i32, i32) {
    %c0_i32 = arith.constant 0 : i32
    %c0_i32_0 = arith.constant 0 : i32
    %c0_i32_1 = arith.constant 0 : i32
    return %c0_i32, %c0_i32_0 : i32, i32
  }
  func.func @transform_2(%arg0: i32) -> (i32, i32) {
    %c0_i32 = arith.constant 0 : i32
    %c0_i32_0 = arith.constant 0 : i32
    %c0_i32_1 = arith.constant 0 : i32
    return %c0_i32, %c0_i32_0 : i32, i32
  }
  func.func @transform_3(%arg0: i32) -> (i32, i32, i32) {
    %c0_i32 = arith.constant 0 : i32
    %c0_i32_0 = arith.constant 0 : i32
    %c0_i32_1 = arith.constant 0 : i32
    return %arg0, %c0_i32, %c0_i32_0 : i32, i32, i32
  }
}

</mosaic_0001>

<bundles_post_ra>
// kernel: tpu_custom_call.1
= control target key start
LH: loop header
LB: loop body
LE: loop exit
PB: predicated region body
PF: predicated region fallthrough
CT: control target
= control target key end

     0   :  { %8 = vsyncpa [#allocation3], 0  ;;  %s950_s0 = inlined_call_operand.hbm [shape: f32[2,64,256], index: 0, kind: input, shape index: {}]   ;;  %s951_s1 = inlined_call_operand.vmem [shape: f32[4,64], index: 1, kind: input, shape index: {}]   ;;  %s952_s2 = inlined_call_operand.vmem [shape: f32[64,4], index: 2, kind: input, shape index: {}]   ;;  %s953_s3 = inlined_call_operand.hbm [shape: f32[2,64,256], index: 3, kind: output, shape index: {}]  }
   0x1   :  { %9 = vsyncpa [#allocation4], 0  ;;  %s693_s12 = smov [#allocation2]   ;;  %s645_s16 = scalar_lea.hbm %s950_s0, 4096 }
   0x2   :  { %s15_s13 = sshll.u32 %s693_s12, 4  ;;  %p646_p0 = scmp.ne.s32.totalorder %s950_s0, %s645_s16  ;;  %s16_s13 = int_to_ptr.vmem [resolvable:$true] %s15_s13 }
   0x3   :  { %p649_p1 = scmp.lt.u32.totalorder %s645_s16, %s950_s0 }
   0x5   :  { %p651_p2 = pnand %p649_p1, %p646_p0 }
   0x7   :  { %654 = shalt.err (!%p651_p2)
}
   0x8   :  { %s655_s21 = scalar_lea.vmem %s16_s13, 4096  ;;  %p660_p4 = scmp.lt.s32.totalorder %s16_s13, %s16_s13 }
   0x9   :  { %p656_p3 = scmp.ne.s32.totalorder %s16_s13, %s655_s21  ;;  %p661_p5 = scmp.lt.s32.totalorder %s655_s21, %s655_s21 }
   0xb   :  { %p662_p6 = por %p661_p5, %p660_p4 }
   0xd   :  { %p663_p7 = pnand %p662_p6, %p656_p3 }
   0xf   :  { %666 = shalt.err (!%p663_p7)
}
  0x10   :  { %s694_s22 = smov 256   ;;  %s695_s23 = smov 16  }
  0x11   :  { %21 = dma.hbm_to_vmem [thread:$0]  %s950_s0, 4096, %s16_s13, [#allocation3], %s694_s22, %s694_s22, %s695_s23  }
  0x12   :  { %689 = dma.done.wait [#allocation3], 4096  }
  0x13   :  { %690 = vsyncadd [#allocation3], 4294963200  ;;  %v735_v0 = vld [vmem:[#allocation2 + $0x80] sm:$0xff]  ;;  %v737_v1 = vld [vmem:[#allocation2 + $0x88] sm:$0xff]  ;;  %v954_v48 = vmov 0.0   ;;  %vm238_vm0 = vcmask 523264  }
  0x14   :  { %v739_v2 = vld [vmem:[#allocation2] sm:$0xff]  ;;  %v85_v3 = vadd.f32 %v737_v1, %v735_v0  ;;  %v743_v4 = vld [vmem:[#allocation2 + $0x8] sm:$0xff]  ;;  %v745_v5 = vld [vmem:[#allocation2 + $0x90] sm:$0xff]  ;;  %598 = vmatprep.subr.mxu0 %v954_v48  ;;  %vm697_vm1 = vmmov 0   ;;  %vm323_vm2 = vcmask 31744   ;;  %v698_v52 = vmov 0.0|0.0  }
  0x15   :  { %v747_v6 = vld [vmem:[#allocation2 + $0x98] sm:$0xff]  ;;  %v61_v7 = vadd.f32 %v743_v4, %v739_v2  ;;  %v751_v8 = vld [vmem:[#allocation2 + $0x10] sm:$0xff]  ;;  %v759_v12 = vld [vmem:[#allocation2 + $0xa0] sm:$0xff]  ;;  %600 = vmatprep.mubr.msk.f32.mxu0 %vm697_vm1, %v954_v48  ;;  %619 = vmatprep.mubr.msk.f32.mxu1 %vm697_vm1, %v954_v48  ;;  %vm153_vm4 = vcmask 130112   ;;  %vm160_vm5 = vcmask 195712   ;;  %vm167_vm6 = vcmask 261312  }
  0x16   :  { %v753_v9 = vld [vmem:[#allocation2 + $0x18] sm:$0xff]  ;;  %86 = vadd.xlane.f32.xlu1 %v85_v3  ;;  %v88_v10 = vadd.f32 %v747_v6, %v745_v5  ;;  %v761_v13 = vld [vmem:[#allocation2 + $0xa8] sm:$0xff]  ;;  %v763_v14 = vld [vmem:[#allocation2 + $0x20] sm:$0xff]  ;;  %622 = vmatprep.subr.bf16.mxu1 %v698_v52  ;;  %vm174_vm7 = vcmask 326912   ;;  %vm181_vm8 = vcmask 392512   ;;  %vm188_vm9 = vcmask 458112  }
  0x17   :  { %62 = vadd.xlane.f32.xlu0 %v61_v7  ;;  %v64_v11 = vadd.f32 %v753_v9, %v751_v8  ;;  %v765_v15 = vld [vmem:[#allocation2 + $0x28] sm:$0xff]  ;;  %v91_v16 = vadd.f32 %v761_v13, %v759_v12  ;;  %v771_v18 = vld [vmem:[#allocation2 + $0xb0] sm:$0xff]  ;;  %v773_v19 = vld [vmem:[#allocation2 + $0xb8] sm:$0xff]  ;;  %vm195_vm10 = vcmask 523712   ;;  %vm236_vm11 = vcmask 1041409  }
  0x18   :  { %v67_v17 = vadd.f32 %v765_v15, %v763_v14  ;;  %962 = vst [vmem:[#allocation8_spill] sm:$0xff] %v773_v19  ;;  %v775_v20 = vld [vmem:[#allocation2 + $0x30] sm:$0xff]  ;;  %v777_v21 = vld [vmem:[#allocation2 + $0x38] sm:$0xff]  ;;  %v94_v22 = vadd.f32 %v773_v19, %v771_v18  ;;  %v783_v24 = vld [vmem:[#allocation2 + $0xc0] sm:$0xff] }
  0x19   :  { %v70_v23 = vadd.f32 %v777_v21, %v775_v20  ;;  %v785_v25 = vld [vmem:[#allocation2 + $0xc8] sm:$0xff]  ;;  %v787_v26 = vld [vmem:[#allocation2 + $0x40] sm:$0xff]  ;;  %v795_v30 = vld [vmem:[#allocation2 + $0xd0] sm:$0xff] }
  0x1a   :  { %89 = vadd.xlane.f32.xlu1 %v88_v10  ;;  %v789_v27 = vld [vmem:[#allocation2 + $0x48] sm:$0xff]  ;;  %v97_v28 = vadd.f32 %v785_v25, %v783_v24  ;;  %963 = vst [vmem:[#allocation9_spill] sm:$0xff] %v795_v30  ;;  %v797_v31 = vld [vmem:[#allocation2 + $0xd8] sm:$0xff]  ;;  %v799_v32 = vld [vmem:[#allocation2 + $0x50] sm:$0xff] }
  0x1b   :  { %65 = vadd.xlane.f32.xlu0 %v64_v11  ;;  %v73_v29 = vadd.f32 %v789_v27, %v787_v26  ;;  %964 = vst [vmem:[#allocation10_spill] sm:$0xff] %v797_v31  ;;  %v801_v33 = vld [vmem:[#allocation2 + $0x58] sm:$0xff]  ;;  %v100_v34 = vadd.f32 %v797_v31, %v795_v30  ;;  %v807_v36 = vld [vmem:[#allocation2 + $0xe0] sm:$0xff]  ;;  %v809_v37 = vld [vmem:[#allocation2 + $0xe8] sm:$0xff] }
  0x1c   :  { %v76_v35 = vadd.f32 %v801_v33, %v799_v32  ;;  %965 = vst [vmem:[#allocation11_spill] sm:$0xff] %v807_v36  ;;  %966 = vst [vmem:[#allocation12_spill] sm:$0xff] %v809_v37  ;;  %v811_v38 = vld [vmem:[#allocation2 + $0x60] sm:$0xff]  ;;  %v813_v39 = vld [vmem:[#allocation2 + $0x68] sm:$0xff]  ;;  %v103_v40 = vadd.f32 %v809_v37, %v807_v36 }
  0x1d   :  { %v79_v41 = vadd.f32 %v813_v39, %v811_v38  ;;  %v819_v42 = vld [vmem:[#allocation2 + $0xf0] sm:$0xff]  ;;  %v821_v43 = vld [vmem:[#allocation2 + $0xf8] sm:$0xff]  ;;  %v125_v49 = vld [vmem:[%s951_s1] sm:$0xf] }
  0x1e   :  { %92 = vadd.xlane.f32.xlu1 %v91_v16  ;;  %967 = vst [vmem:[#allocation13_spill] sm:$0xff] %v819_v42  ;;  %968 = vst [vmem:[#allocation14_spill] sm:$0xff] %v821_v43  ;;  %v823_v44 = vld [vmem:[#allocation2 + $0x70] sm:$0xff]  ;;  %v825_v45 = vld [vmem:[#allocation2 + $0x78] sm:$0xff]  ;;  %v106_v46 = vadd.f32 %v821_v43, %v819_v42  ;;  %599 = vmatpush3.xpose.msk.msra.mxu0 %vm238_vm0, %v125_v49  ;;  %v142_v16 = vlaneseq }
  0x1f   :  { %68 = vadd.xlane.f32.xlu0 %v67_v17  ;;  %v82_v47 = vadd.f32 %v825_v45, %v823_v44  ;;  %v315_v50 = vld [vmem:[%s952_s2] sm:$0xff]  ;;  %v316_v51 = vld [vmem:[%s952_s2 + $0x8] sm:$0xff]  ;;  %vm846_vm3 = vmpackc.low %vm323_vm2, %vm323_vm2 }
  0x20   :  { %v623_v53 = vpack.c.bf16 %v316_v51, %v315_v50  ;;  %v317_v55 = vld [vmem:[%s952_s2 + $0x10] sm:$0xff]  ;;  %v318_v56 = vld [vmem:[%s952_s2 + $0x18] sm:$0xff]  ;;  %v319_v58 = vld [vmem:[%s952_s2 + $0x20] sm:$0xff] }
  0x21   :  { %v627_v57 = vpack.c.bf16 %v318_v56, %v317_v55  ;;  %v320_v59 = vld [vmem:[%s952_s2 + $0x28] sm:$0xff]  ;;  %v321_v61 = vld [vmem:[%s952_s2 + $0x30] sm:$0xff]  ;;  %v322_v62 = vld [vmem:[%s952_s2 + $0x38] sm:$0xff]  ;;  %s699_s2 = smov [#allocation5]  }
  0x22   :  { %95 = vadd.xlane.f32.xlu1 %v94_v22  ;;  %625 = vmatpush3.bf16.xpose.msk.msra.mxu1 %vm846_vm3, %v623_v53  ;;  %v631_v60 = vpack.c.bf16 %v320_v59, %v319_v58  ;;  %v635_v63 = vpack.c.bf16 %v322_v62, %v321_v61  ;;  %s563_s15 = sshll.u32 %s699_s2, 4  ;;  %s564_s15 = int_to_ptr.vmem [resolvable:$true] %s563_s15 }
  0x23   :  { %71 = vadd.xlane.f32.xlu0 %v70_v23  ;;  %626 = vmatprep.subr.bf16.mxu1 %v698_v52  ;;  %v143_v23 = vand.u32 127, %v142_v16  ;;  %s667_s16 = scalar_lea.vmem %s564_s15, 4096  ;;  %p672_p9 = scmp.lt.s32.totalorder %s564_s15, %s564_s15 }
  0x24   :  { %p668_p8 = scmp.ne.s32.totalorder %s564_s15, %s667_s16  ;;  %p673_p10 = scmp.lt.s32.totalorder %s667_s16, %s667_s16 }
  0x25   :  { %v176_v49 = vadd.s32 4294967256, %v143_v23  ;;  %v183_v54 = vadd.s32 4294967248, %v143_v23 }
  0x26   :  { %98 = vadd.xlane.f32.xlu1 %v97_v28  ;;  %p674_p11 = por %p673_p10, %p672_p9 }
  0x27   :  { %74 = vadd.xlane.f32.xlu0 %v73_v29  ;;  %v876_v29 = vshrl.u32 %v142_v16, 7 }
  0x28   :  { %p675_p12 = pnand %p674_p11, %p668_p8 }
  0x29   :  { %v146_v50 = vsub.s32 %v143_v23, %v876_v29 }
  0x2a   :  { %101 = vadd.xlane.f32.xlu1 %v100_v34  ;;  %629 = vmatpush3.bf16.xpose.msk.msra.mxu1 %vm846_vm3, %v627_v57 }
  0x2b   :  { %77 = vadd.xlane.f32.xlu0 %v76_v35  ;;  %630 = vmatprep.subr.bf16.mxu1 %v698_v52  ;;  %v148_v35 = vadd.s32 4294967288, %v143_v23 }
  0x2e   :  { %104 = vadd.xlane.f32.xlu1 %v103_v40  ;;  %v155_v40 = vadd.s32 4294967280, %v143_v23 }
  0x2f   :  { %80 = vadd.xlane.f32.xlu0 %v79_v41  ;;  %v162_v41 = vadd.s32 4294967272, %v143_v23 }
  0x30   :  { %v158_v53 = vsub.s32 %v155_v40, %v876_v29 }
  0x31   :  { %v165_v56 = vsub.s32 %v162_v41, %v876_v29 }
  0x32   :  { %107 = vadd.xlane.f32.xlu1 %v106_v46  ;;  %633 = vmatpush3.bf16.xpose.msk.msra.mxu1 %vm846_vm3, %v631_v60  ;;  %v169_v46 = vadd.s32 4294967264, %v143_v23  ;;  %v179_v60 = vsub.s32 %v176_v49, %v876_v29 }
  0x33   :  { %83 = vadd.xlane.f32.xlu0 %v82_v47  ;;  %634 = vmatprep.subr.bf16.mxu1 %v698_v52  ;;  %v151_v52 = vsub.s32 %v148_v35, %v876_v29 }
  0x34   :  { %v172_v57 = vsub.s32 %v169_v46, %v876_v29  ;;  %v190_v46 = vadd.s32 4294967240, %v143_v23 }
  0x36   :  { %v193_v23 = vsub.s32 %v190_v46, %v876_v29 }
  0x3a   :  { %637 = vmatpush3.bf16.xpose.msk.msra.mxu1 %vm846_vm3, %v635_v63 }
  0xa3   :  { %v87_v3 = vpop.xlane.xlu1 %86 }
  0xa4   :  { %v63_v7 = vpop.xlane.xlu0 %62  ;;  %v117_v62 = vmul.f32 0.00390625, %v87_v3 }
  0xa5   :  { %v109_v40 = vmul.f32 0.00390625, %v63_v7 }
  0xa6   :  { %v200_v37 = vrot.slane %v117_v62, %v146_v50 }
  0xa7   :  { %v90_v10 = vpop.xlane.xlu1 %89  ;;  %v147_v19 = vrot.slane %v109_v40, %v146_v50 }
  0xa8   :  { %v66_v11 = vpop.xlane.xlu0 %65  ;;  %v118_v55 = vmul.f32 0.00390625, %v90_v10  ;;  %v186_v10 = vsub.s32 %v183_v54, %v876_v29 }
  0xa9   :  { %v110_v58 = vmul.f32 0.00390625, %v66_v11 }
  0xaa   :  { %v204_v41 = vrot.slane %v118_v55, %v151_v52 }
  0xab   :  { %v93_v17 = vpop.xlane.xlu1 %92  ;;  %v152_v11 = vrot.slane %v110_v58, %v151_v52 }
  0xac   :  { %v69_v22 = vpop.xlane.xlu0 %68  ;;  %v119_v59 = vmul.f32 0.00390625, %v93_v17  ;;  %v205_v54 = vsel %vm153_vm4, %v204_v41, %v200_v37 }
  0xad   :  { %v111_v63 = vmul.f32 0.00390625, %v69_v22  ;;  %v154_v52 = vsel %vm153_vm4, %v152_v11, %v147_v19 }
  0xae   :  { %v209_v17 = vrot.slane %v119_v59, %v158_v53 }
  0xaf   :  { %v96_v28 = vpop.xlane.xlu1 %95  ;;  %v159_v3 = vrot.slane %v111_v63, %v158_v53 }
  0xb0   :  { %v72_v34 = vpop.xlane.xlu0 %71  ;;  %v120_v16 = vmul.f32 0.00390625, %v96_v28  ;;  %v210_v58 = vsel %vm160_vm5, %v209_v17, %v205_v54  ;;  %v426_v17 = vsub.s32 0, %v876_v29 }
  0xb1   :  { %v112_v48 = vmul.f32 0.00390625, %v72_v34  ;;  %v161_v62 = vsel %vm160_vm5, %v159_v3, %v154_v52 }
  0xb2   :  { %v214_v22 = vrot.slane %v120_v16, %v165_v56 }
  0xb3   :  { %v99_v47 = vpop.xlane.xlu1 %98  ;;  %v166_v7 = vrot.slane %v112_v48, %v165_v56 }
  0xb4   :  { %v75_v51 = vpop.xlane.xlu0 %74  ;;  %v121_v43 = vmul.f32 0.00390625, %v99_v47  ;;  %v215_v50 = vsel %vm167_vm6, %v214_v22, %v210_v58  ;;  %v971_v22 = vmov 0.0  }
  0xb5   :  { %v113_v42 = vmul.f32 0.00390625, %v75_v51  ;;  %v168_v37 = vsel %vm167_vm6, %v166_v7, %v161_v62 }
  0xb6   :  { %v219_v34 = vrot.slane %v121_v43, %v172_v57 }
  0xb7   :  { %v102_v61 = vpop.xlane.xlu1 %101  ;;  %v173_v55 = vrot.slane %v113_v42, %v172_v57 }
  0xb8   :  { %v78_v35 = vpop.xlane.xlu0 %77  ;;  %v122_v31 = vmul.f32 0.00390625, %v102_v61 }
  0xb9   :  { %v114_v30 = vmul.f32 0.00390625, %v78_v35  ;;  %v175_v19 = vsel %vm174_vm7, %v173_v55, %v168_v37 }
  0xba   :  { %v224_v51 = vrot.slane %v122_v31, %v179_v60  ;;  %v220_v31 = vsel %vm174_vm7, %v219_v34, %v215_v50  ;;  %v461_v34 = vsub.s32 1, %v876_v29 }
  0xbb   :  { %v105_v49 = vpop.xlane.xlu1 %104  ;;  %v180_v59 = vrot.slane %v114_v30, %v179_v60 }
  0xbc   :  { %v123_v28 = vmul.f32 0.00390625, %v105_v49  ;;  %v81_v36 = vpop.xlane.xlu0 %80  ;;  %v225_v56 = vsel %vm181_vm8, %v224_v51, %v220_v31 }
  0xbd   :  { %v115_v47 = vmul.f32 0.00390625, %v81_v36  ;;  %v182_v57 = vsel %vm181_vm8, %v180_v59, %v175_v19 }
  0xbe   :  { %v229_v61 = vrot.slane %v123_v28, %v186_v10 }
  0xbf   :  { %v108_v53 = vpop.xlane.xlu1 %107  ;;  %v187_v48 = vrot.slane %v115_v47, %v186_v10 }
  0xc0   :  { %v124_v43 = vmul.f32 0.00390625, %v108_v53  ;;  %v84_v36 = vpop.xlane.xlu0 %83  ;;  %v230_v60 = vsel %vm188_vm9, %v229_v61, %v225_v56  ;;  %v972_v56 = vld [vmem:[#allocation8_spill] sm:$0xff] }
  0xc1   :  { %v116_v42 = vmul.f32 0.00390625, %v84_v36  ;;  %v189_v16 = vsel %vm188_vm9, %v187_v48, %v182_v57  ;;  %v973_v57 = vld [vmem:[#allocation11_spill] sm:$0xff] }
  0xc2   :  { %v234_v30 = vrot.slane %v124_v43, %v193_v23 }
  0xc3   :  { %v194_v63 = vrot.slane %v116_v42, %v193_v23 }
  0xc4   :  { %v235_v35 = vsel %vm195_vm10, %v234_v30, %v230_v60 }
  0xc5   :  { %v196_v40 = vsel %vm195_vm10, %v194_v63, %v189_v16  ;;  %v974_v63 = vld [vmem:[#allocation12_spill] sm:$0xff]  ;;  %v976_v16 = vld [vmem:[#allocation10_spill] sm:$0xff] }
  0xc6   :  { %v237_v10 = vsel %vm236_vm11, %v235_v35, %v196_v40  ;;  %v977_v40 = vld [vmem:[#allocation13_spill] sm:$0xff] }
  0xc7   :  { %601 = vmatmul.mubr.msk.f32.vlgmr.msra.gmra.mrb[0].mxu0 %vm238_vm0, %v237_v10 }
 0x19a   :  { %v310_v41 = vpop.f32.mrb[0].mxu0 }
 0x19b   :  { %v314_v46 = vmax.f32 %v310_v41, 0.0  ;;  %v602_v11 = vpop.f32.mrb[1].mxu0  ;;  %v978_v41 = vld [vmem:[#allocation14_spill] sm:$0xff] }
 0x19d   :  { %620 = vmatmul.mubr.msk.f32.vlgmr.msra.gmra.mrb[0].mxu1 %vm323_vm2, %v314_v46 }
 0x270   :  { %v417_v49 = vpop.f32.mrb[0].mxu1 }
 0x271   :  { %vm421_vm12 = vcmp.lt.f32.partialorder %v417_v49, 0.0  ;;  %v621_v3 = vpop.f32.mrb[1].mxu1 }
 0x272   :  { %v586_v28 = vsel %vm421_vm12, 1.0, %v971_v22 }
 0x273   :  { %v427_v7 = vrot.slane %v586_v28, %v426_v17  ;;  %v462_v47 = vrot.slane %v586_v28, %v461_v34 }
 0x275   :  { %433 = vbcast.lane.b32.xlu1 %v427_v7, 264  ;;  %429 = vbcast.lane.b32.xlu0 %v427_v7, 256 }
 0x279   :  { %437 = vbcast.lane.b32.xlu1 %v427_v7, 272  ;;  %445 = vbcast.lane.b32.xlu0 %v427_v7, 288 }
 0x27d   :  { %441 = vbcast.lane.b32.xlu1 %v427_v7, 280  ;;  %453 = vbcast.lane.b32.xlu0 %v427_v7, 304 }
 0x281   :  { %449 = vbcast.lane.b32.xlu1 %v427_v7, 296  ;;  %464 = vbcast.lane.b32.xlu0 %v462_v47, 256 }
 0x285   :  { %457 = vbcast.lane.b32.xlu1 %v427_v7, 312  ;;  %472 = vbcast.lane.b32.xlu0 %v462_v47, 272 }
 0x289   :  { %468 = vbcast.lane.b32.xlu1 %v462_v47, 264  ;;  %480 = vbcast.lane.b32.xlu0 %v462_v47, 288 }
 0x28d   :  { %476 = vbcast.lane.b32.xlu1 %v462_v47, 280  ;;  %488 = vbcast.lane.b32.xlu0 %v462_v47, 304 }
 0x291   :  { %484 = vbcast.lane.b32.xlu1 %v462_v47, 296 }
 0x295   :  { %492 = vbcast.lane.b32.xlu1 %v462_v47, 312 }
 0x2e7   :  { %v434_v54 = vpop.permute.xlu1 %433  ;;  %v430_v55 = vpop.permute.xlu0 %429 }
 0x2e8   :  { %v496_v51 = vmul.f32 %v434_v54, %v751_v8  ;;  %v497_v23 = vmul.f32 %v434_v54, %v753_v9  ;;  %v494_v29 = vmul.f32 %v430_v55, %v739_v2  ;;  %v495_v52 = vmul.f32 %v430_v55, %v743_v4 }
 0x2ea   :  { %528 = vst [vmem:[#allocation5 + $0x10] sm:$0xff] %v496_v51  ;;  %529 = vst [vmem:[#allocation5 + $0x18] sm:$0xff] %v497_v23 }
 0x2eb   :  { %526 = vst [vmem:[#allocation5] sm:$0xff] %v494_v29  ;;  %527 = vst [vmem:[#allocation5 + $0x8] sm:$0xff] %v495_v52  ;;  %v438_v58 = vpop.permute.xlu1 %437  ;;  %v446_v59 = vpop.permute.xlu0 %445 }
 0x2ec   :  { %v498_v61 = vmul.f32 %v438_v58, %v763_v14  ;;  %v499_v53 = vmul.f32 %v438_v58, %v765_v15  ;;  %v502_v62 = vmul.f32 %v446_v59, %v787_v26  ;;  %v503_v8 = vmul.f32 %v446_v59, %v789_v27 }
 0x2ee   :  { %530 = vst [vmem:[#allocation5 + $0x20] sm:$0xff] %v498_v61  ;;  %531 = vst [vmem:[#allocation5 + $0x28] sm:$0xff] %v499_v53 }
 0x2ef   :  { %534 = vst [vmem:[#allocation5 + $0x40] sm:$0xff] %v502_v62  ;;  %535 = vst [vmem:[#allocation5 + $0x48] sm:$0xff] %v503_v8  ;;  %v442_v2 = vpop.permute.xlu1 %441  ;;  %v454_v4 = vpop.permute.xlu0 %453 }
 0x2f0   :  { %v500_v9 = vmul.f32 %v442_v2, %v775_v20  ;;  %v501_v50 = vmul.f32 %v442_v2, %v777_v21  ;;  %v506_v48 = vmul.f32 %v454_v4, %v811_v38  ;;  %v507_v14 = vmul.f32 %v454_v4, %v813_v39 }
 0x2f2   :  { %532 = vst [vmem:[#allocation5 + $0x30] sm:$0xff] %v500_v9  ;;  %533 = vst [vmem:[#allocation5 + $0x38] sm:$0xff] %v501_v50 }
 0x2f3   :  { %538 = vst [vmem:[#allocation5 + $0x60] sm:$0xff] %v506_v48  ;;  %539 = vst [vmem:[#allocation5 + $0x68] sm:$0xff] %v507_v14  ;;  %v450_v15 = vpop.permute.xlu1 %449  ;;  %v465_v26 = vpop.permute.xlu0 %464 }
 0x2f4   :  { %v504_v27 = vmul.f32 %v450_v15, %v799_v32  ;;  %v505_v43 = vmul.f32 %v450_v15, %v801_v33  ;;  %v510_v36 = vmul.f32 %v465_v26, %v735_v0  ;;  %v511_v20 = vmul.f32 %v465_v26, %v737_v1 }
 0x2f6   :  { %536 = vst [vmem:[#allocation5 + $0x50] sm:$0xff] %v504_v27  ;;  %537 = vst [vmem:[#allocation5 + $0x58] sm:$0xff] %v505_v43 }
 0x2f7   :  { %542 = vst [vmem:[#allocation5 + $0x80] sm:$0xff] %v510_v36  ;;  %543 = vst [vmem:[#allocation5 + $0x88] sm:$0xff] %v511_v20  ;;  %v458_v21 = vpop.permute.xlu1 %457  ;;  %v473_v38 = vpop.permute.xlu0 %472 }
 0x2f8   :  { %v508_v39 = vmul.f32 %v458_v21, %v823_v44  ;;  %v509_v37 = vmul.f32 %v458_v21, %v825_v45  ;;  %v514_v31 = vmul.f32 %v473_v38, %v759_v12  ;;  %v515_v32 = vmul.f32 %v473_v38, %v761_v13 }
 0x2fa   :  { %540 = vst [vmem:[#allocation5 + $0x70] sm:$0xff] %v508_v39  ;;  %541 = vst [vmem:[#allocation5 + $0x78] sm:$0xff] %v509_v37 }
 0x2fb   :  { %546 = vst [vmem:[#allocation5 + $0xa0] sm:$0xff] %v514_v31  ;;  %547 = vst [vmem:[#allocation5 + $0xa8] sm:$0xff] %v515_v32  ;;  %v469_v0 = vpop.permute.xlu1 %468  ;;  %v481_v1 = vpop.permute.xlu0 %480 }
 0x2fc   :  { %v512_v33 = vmul.f32 %v469_v0, %v745_v5  ;;  %v513_v42 = vmul.f32 %v469_v0, %v747_v6  ;;  %v518_v19 = vmul.f32 %v481_v1, %v783_v24  ;;  %v519_v44 = vmul.f32 %v481_v1, %v785_v25  ;;  %v975_v24 = vld [vmem:[#allocation9_spill] sm:$0xff] }
 0x2fe   :  { %544 = vst [vmem:[#allocation5 + $0x90] sm:$0xff] %v512_v33  ;;  %545 = vst [vmem:[#allocation5 + $0x98] sm:$0xff] %v513_v42 }
 0x2ff   :  { %550 = vst [vmem:[#allocation5 + $0xc0] sm:$0xff] %v518_v19  ;;  %551 = vst [vmem:[#allocation5 + $0xc8] sm:$0xff] %v519_v44  ;;  %v477_v12 = vpop.permute.xlu1 %476  ;;  %v489_v13 = vpop.permute.xlu0 %488 }
 0x300   :  { %v516_v45 = vmul.f32 %v477_v12, %v771_v18  ;;  %v517_v30 = vmul.f32 %v477_v12, %v972_v56  ;;  %v522_v60 = vmul.f32 %v489_v13, %v973_v57  ;;  %v523_v5 = vmul.f32 %v489_v13, %v974_v63 }
 0x302   :  { %548 = vst [vmem:[#allocation5 + $0xb0] sm:$0xff] %v516_v45  ;;  %549 = vst [vmem:[#allocation5 + $0xb8] sm:$0xff] %v517_v30 }
 0x303   :  { %554 = vst [vmem:[#allocation5 + $0xe0] sm:$0xff] %v522_v60  ;;  %555 = vst [vmem:[#allocation5 + $0xe8] sm:$0xff] %v523_v5  ;;  %v485_v6 = vpop.permute.xlu1 %484 }
 0x304   :  { %v520_v25 = vmul.f32 %v485_v6, %v975_v24  ;;  %v521_v35 = vmul.f32 %v485_v6, %v976_v16 }
 0x306   :  { %552 = vst [vmem:[#allocation5 + $0xd0] sm:$0xff] %v520_v25  ;;  %553 = vst [vmem:[#allocation5 + $0xd8] sm:$0xff] %v521_v35 }
 0x307   :  { %v493_v18 = vpop.permute.xlu1 %492 }
 0x308   :  { %v524_v10 = vmul.f32 %v493_v18, %v977_v40  ;;  %v525_v46 = vmul.f32 %v493_v18, %v978_v41 }
 0x30a   :  { %556 = vst [vmem:[#allocation5 + $0xf0] sm:$0xff] %v524_v10  ;;  %557 = vst [vmem:[#allocation5 + $0xf8] sm:$0xff] %v525_v46 }
 0x30b   :  { %678 = shalt.err (!%p675_p12)
}
 0x30c   :  { %s679_s19 = scalar_lea.hbm %s953_s3, 4096 }
 0x30d   :  { %p680_p13 = scmp.ne.s32.totalorder %s953_s3, %s679_s19  ;;  %p683_p0 = scmp.lt.u32.totalorder %s679_s19, %s953_s3 }
 0x30f   :  { %p685_p1 = pnand %p683_p0, %p680_p13 }
 0x311   :  { %688 = shalt.err (!%p685_p1)
}
 0x312   :  { %569 = dma.vmem_to_hbm [thread:$0]  %s564_s15, 4096, %s953_s3, [#allocation4], %s694_s22, %s694_s22, %s695_s23  }
 0x313   :  { %691 = dma.done.wait [#allocation4], 4096  }
 0x314   :  { %692 = vsyncadd [#allocation4], 4294963200 }
 0x315   :  { %573 = vsyncpa [#allocation3], 1 }
 0x316   :  { %574 = vsyncpa [#allocation4], 1 }

</bundles_post_ra>
